<compile_context>
chip_gen: v5e
topology: v5e:2x2
jax: 0.10.0
libtpu: 0.0.40
codegen_flags: <defaults>
</compile_context>

<pallas_src>
import jax
import jax.numpy as jnp
from jax.experimental import pallas as pl
from jax.experimental.pallas import tpu as pltpu

_LANE = 128
_MIB = 1024 * 1024


def _round_up(v, m):
    return ((v + m - 1) // m) * m


def _cdiv(a, b):
    return -(-a // b)


def _mmd_linear_partials_kernel(x_ref, y_ref,
                                dxx_ref, dyy_ref, dxy_ref, dyx_ref, tot_ref):
    """Accumulate over the feature (lane) grid axis:
         * per-row squared distances of the linear-MMD neighbour pairs (i, (i+1)%b)
         * the all-pairs squared-distance total used for the default bandwidth.
    Grid = (core_split, d_block); outputs are VMEM-resident accumulators over the
    'arbitrary' d_block axis, one slot per 'parallel' core split.
    """
    k = pl.program_id(1)

    @pl.when(k == 0)
    def _init():
        dxx_ref[...] = jnp.zeros_like(dxx_ref)
        dyy_ref[...] = jnp.zeros_like(dyy_ref)
        dxy_ref[...] = jnp.zeros_like(dxy_ref)
        dyx_ref[...] = jnp.zeros_like(dyx_ref)
        tot_ref[...] = jnp.zeros_like(tot_ref)

    x = x_ref[...].astype(jnp.float32)   # (b, tk)  (bf16 inputs upcast here)
    y = y_ref[...].astype(jnp.float32)   # (b, tk)
    b = x.shape[0]
    n = 2.0 * b

    # Neighbour rows for pairs (i, (i+1) % b): sublane rotation (XLU slot, no MXU,
    # no b x b gram).  The summed loss is invariant to the rotation direction.
    x_nxt = pltpu.roll(x, shift=b - 1, axis=0)
    y_nxt = pltpu.roll(y, shift=b - 1, axis=0)

    # Direct differences (review): more accurate than |a|^2 + |b|^2 - 2 a.b at f32,
    # always >= 0, and free while HBM-bound.  Kept on the VPU (no MXU, per review).
    df = x - x_nxt
    dxx_ref[...] += jnp.sum(df * df, axis=1, keepdims=True)   # |x_i - x_{i+1}|^2
    df = y - y_nxt
    dyy_ref[...] += jnp.sum(df * df, axis=1, keepdims=True)   # |y_i - y_{i+1}|^2
    df = x - y_nxt
    dxy_ref[...] += jnp.sum(df * df, axis=1, keepdims=True)   # |x_i - y_{i+1}|^2
    df = x_nxt - y
    dyx_ref[...] += jnp.sum(df * df, axis=1, keepdims=True)   # |x_{i+1} - y_i|^2

    # Default-bandwidth partial: sum of ALL pairwise sq-distances of z = [x; y]:
    #   sum_{i,j} |z_i - z_j|^2 = sum_lanes 2n * sum_i (z_il - mean_l)^2
    # Exact here because only the feature axis is tiled (every block sees all 2b
    # rows of its lanes); mean-centring avoids catastrophic cancellation and keeps
    # the partial non-negative (review correctness concern).
    col_mean = (jnp.sum(x, axis=0, keepdims=True) +
                jnp.sum(y, axis=0, keepdims=True)) * (1.0 / n)          # (1, tk)
    xc = x - col_mean
    yc = y - col_mean
    tot = 2.0 * n * (jnp.sum(xc * xc) + jnp.sum(yc * yc))               # scalar
    tot_ref[...] += jnp.full((1, 1), tot, dtype=jnp.float32)


def _choose_tiling(b, d, itemsize, block_lanes=None):
    """Pick lane tile tk, blocks-per-split, core splits, padded d and vmem limit."""
    d_lane = _round_up(d, _LANE)
    # conservative per-lane-column VMEM cost: 2 inputs x 2 pipeline buffers plus
    # ~8 f32 (b, tk) working arrays for the in-kernel temporaries.
    per_col = b * (4 * itemsize + 8 * 4)
    if block_lanes is not None:
        tk_max = max(_LANE, (int(block_lanes) // _LANE) * _LANE)
    else:
        budget = 14 * _MIB                       # fits every chip's default scoped VMEM
        tk_max = max(_LANE, (budget // per_col) // _LANE * _LANE)
        tk_max = min(tk_max, 2048, d_lane)
        # keep >= 512 lanes for DMA efficiency when the feature dim (and a hard
        # 40 MiB cap, sized for v7x's 64 MiB/TC) allow it; if that exceeds the
        # default scoped-VMEM budget we raise vmem_limit_bytes instead of
        # shrinking the tile.
        if d_lane >= 512 and tk_max < 512 and per_col * 512 <= 40 * _MIB:
            tk_max = 512

    k0 = _cdiv(d_lane, tk_max)                   # number of lane blocks
    num_splits = 2 if k0 >= 2 else 1             # v7x: one 'parallel' slot per TC
    k_total = _round_up(k0, num_splits)
    if k_total == 1:
        tk, d_pad = d, d                         # single full-extent block, no padding
    else:
        tk = _round_up(_cdiv(d_lane, k_total), _LANE)
        d_pad = tk * k_total
    kps = k_total // num_splits                  # d blocks per core split

    footprint = per_col * tk + _MIB
    vmem_limit = None
    if footprint > 14 * _MIB:                    # default scoped VMEM may not suffice
        vmem_limit = min(48 * _MIB, _round_up(footprint, _MIB) + 4 * _MIB)
    return tk, kps, num_splits, d_pad, vmem_limit


def mmd_loss(x, y, kernel_scales=1.0, *, block_lanes=None):
    """Pallas implementation of MMDLoss(mmd_type='linear').forward(x, y)."""
    if isinstance(x, (list, tuple)) or isinstance(y, (list, tuple)):
        # TODO(synk): list-of-tensors (JMMD) path not implemented.
        raise NotImplementedError("JMMD (list inputs) is not supported")
    if len(x.shape) != 2 or x.shape != y.shape:
        raise ValueError(
            "For mmd_type 'linear', source and target must have the same batch size.")
    if jnp.ndim(kernel_scales) != 0:
        # TODO(synk): tensor kernel_scales (multiple bandwidths) not implemented.
        raise NotImplementedError("tensor kernel_scales is not supported")

    b, d = x.shape
    itemsize = jnp.dtype(x.dtype).itemsize
    tk, kps, num_splits, d_pad, vmem_limit = _choose_tiling(b, d, itemsize, block_lanes)

    if d_pad != d:
        # zero feature-padding is exactly neutral for every accumulated quantity
        x = jnp.pad(x, ((0, 0), (0, d_pad - d)))
        y = jnp.pad(y, ((0, 0), (0, d_pad - d)))

    # NOTE: if an xprof sweep still shows exposed DMA at tk >= 512, add
    #       pipeline_mode=pl.Buffered(3) to the two input BlockSpecs (review).
    in_spec = pl.BlockSpec((b, tk), lambda s, k: (0, s * kps + k))
    row_spec = pl.BlockSpec((None, b, 1), lambda s, k: (s, 0, 0))
    sc_spec = pl.BlockSpec((None, 1, 1), lambda s, k: (s, 0, 0))
    row_shape = jax.ShapeDtypeStruct((num_splits, b, 1), jnp.float32)

    compiler_kwargs = dict(dimension_semantics=("parallel", "arbitrary"))
    if vmem_limit is not None:
        compiler_kwargs["vmem_limit_bytes"] = int(vmem_limit)

    dxx, dyy, dxy, dyx, tot = pl.pallas_call(
        _mmd_linear_partials_kernel,
        out_shape=(row_shape, row_shape, row_shape, row_shape,
                   jax.ShapeDtypeStruct((num_splits, 1, 1), jnp.float32)),
        grid_spec=pltpu.PrefetchScalarGridSpec(
            num_scalar_prefetch=0,
            grid=(num_splits, kps),
            in_specs=[in_spec, in_spec],
            out_specs=[row_spec, row_spec, row_spec, row_spec, sc_spec],
        ),
        compiler_params=pltpu.CompilerParams(**compiler_kwargs),
    )(x, y)

    # Tiny O(b) finalization (bandwidth, 4*b exponentials, mean) in plain JAX so
    # the memory-bound streaming phase above can run 'parallel' on both v7x cores.
    d_xx = jnp.sum(dxx, axis=0)
    d_yy = jnp.sum(dyy, axis=0)
    d_xy = jnp.sum(dxy, axis=0)
    d_yx = jnp.sum(dyx, axis=0)
    total = jnp.sum(tot)                          # >= 0 by construction
    n = 2.0 * b
    bandwidth = total / (n * n - n)
    scale = bandwidth * jnp.asarray(kernel_scales, dtype=jnp.float32)
    # Same Inf/NaN failure mode as the PyTorch reference when x == y (bandwidth -> 0).
    neg_inv_bw = -1.0 / scale
    pair_terms = (jnp.exp(d_xx * neg_inv_bw) + jnp.exp(d_yy * neg_inv_bw)
                  - jnp.exp(d_xy * neg_inv_bw) - jnp.exp(d_yx * neg_inv_bw))
    return jnp.sum(pair_terms) / b


def _mmd_loss_ref(x, y, kernel_scales=1.0):
    """Straight O(b^2) port of the PyTorch formulation (verification only)."""
    x = x.astype(jnp.float32)
    y = y.astype(jnp.float32)
    b = x.shape[0]
    sqdist = lambda a, c: jnp.sum((a[:, None, :] - c[None, :, :]) ** 2, axis=-1)
    xx, yy, zz = sqdist(x, x), sqdist(y, y), sqdist(x, y)
    n = 2 * b
    bandwidth = (jnp.sum(xx) + jnp.sum(yy) + 2.0 * jnp.sum(zz)) / (n * n - n)
    scale = bandwidth * kernel_scales
    kxx, kyy, kzz = jnp.exp(-xx / scale), jnp.exp(-yy / scale), jnp.exp(-zz / scale)
    i = jnp.arange(b)
    j = (i + 1) % b
    return jnp.mean(kxx[i, j] + kyy[i, j] - kzz[i, j] - kzz[j, i])


if __name__ == "__main__":
    key = jax.random.PRNGKey(0)
    kx, ky = jax.random.split(key)

    # Small default-path case: batch=8 per domain, hidden=32 (single block, 1 split).
    b, dfeat = 8, 32
    x = jax.random.normal(kx, (b, dfeat), dtype=jnp.float32)
    y = jax.random.normal(ky, (b, dfeat), dtype=jnp.float32) + 0.5
    loss = mmd_loss(x, y)
    jax.block_until_ready(loss)
    ref = _mmd_loss_ref(x, y)
    assert abs(float(loss) - float(ref)) <= 1e-3 * max(1.0, abs(float(ref))), (loss, ref)

    # Small case exercising the tiled path (bf16 inputs, d=448 -> padded to 4 x 128
    # lane blocks, 2 'parallel' core splits x 2 'arbitrary' accumulation steps).
    kx2, ky2 = jax.random.split(ky)
    b2, d2 = 8, 448
    x2 = jax.random.normal(kx2, (b2, d2), dtype=jnp.float32).astype(jnp.bfloat16)
    y2 = (jax.random.normal(ky2, (b2, d2), dtype=jnp.float32) + 0.25).astype(jnp.bfloat16)
    loss2 = mmd_loss(x2, y2, block_lanes=128)
    jax.block_until_ready(loss2)
    ref2 = _mmd_loss_ref(x2, y2)
    assert abs(float(loss2) - float(ref2)) <= 5e-3 * max(1.0, abs(float(ref2))), (loss2, ref2)

    print("KERNEL_OK")
</pallas_src>

<mosaic_0001>
module attributes {stable_mosaic.version = 11 : i64} {
  func.func @_mmd_linear_partials_kernel(%arg0: i32, %arg1: i32, %arg2: memref<8x32xf32, #tpu.memory_space<vmem>>, %arg3: memref<8x32xf32, #tpu.memory_space<vmem>>, %arg4: memref<1x8x1xf32, #tpu.memory_space<vmem>>, %arg5: memref<1x8x1xf32, #tpu.memory_space<vmem>>, %arg6: memref<1x8x1xf32, #tpu.memory_space<vmem>>, %arg7: memref<1x8x1xf32, #tpu.memory_space<vmem>>, %arg8: memref<1x1x1xf32, #tpu.memory_space<vmem>>) attributes {dimension_semantics = [#tpu.dimension_semantics<parallel>, #tpu.dimension_semantics<arbitrary>], iteration_bounds = array<i64: 1, 1>, scalar_prefetch = 0 : i64, scratch_operands = 0 : i64, tpu.core_type = #tpu.core_type<tc>, window_params = [{transform_indices = @transform_0, window_bounds = array<i64: 8, 32>}, {transform_indices = @transform_1, window_bounds = array<i64: 8, 32>}, {transform_indices = @transform_2, window_bounds = array<i64: 1, 8, 1>}, {transform_indices = @transform_3, window_bounds = array<i64: 1, 8, 1>}, {transform_indices = @transform_4, window_bounds = array<i64: 1, 8, 1>}, {transform_indices = @transform_5, window_bounds = array<i64: 1, 8, 1>}, {transform_indices = @transform_6, window_bounds = array<i64: 1, 1, 1>}]} {
    %c0_i32 = arith.constant 0 : i32
    %0 = arith.cmpi eq, %arg1, %c0_i32 : i32
    %1 = arith.extui %0 : i1 to i32
    %c0_i32_0 = arith.constant 0 : i32
    %2 = arith.cmpi ne, %1, %c0_i32_0 : i32
    scf.if %2 {
      %cst_44 = arith.constant 0.000000e+00 : f32
      %77 = vector.broadcast %cst_44 : f32 to vector<8x1xf32>
      %c0_45 = arith.constant 0 : index
      %c0_46 = arith.constant 0 : index
      %c0_47 = arith.constant 0 : index
      %78 = vector.load %arg4[%c0_45, %c0_46, %c0_47] : memref<1x8x1xf32, #tpu.memory_space<vmem>>, vector<1x8x1xf32>
      %79 = vector.shape_cast %78 : vector<1x8x1xf32> to vector<8x1xf32>
      %80 = vector.shape_cast %77 : vector<8x1xf32> to vector<1x8x1xf32>
      tpu.vector_store %arg4[%c0_45, %c0_46, %c0_47], %80 {strides = array<i32>} : memref<1x8x1xf32, #tpu.memory_space<vmem>>, vector<1x8x1xf32>,
      %cst_48 = arith.constant 0.000000e+00 : f32
      %81 = vector.broadcast %cst_48 : f32 to vector<8x1xf32>
      %c0_49 = arith.constant 0 : index
      %c0_50 = arith.constant 0 : index
      %c0_51 = arith.constant 0 : index
      %82 = vector.load %arg5[%c0_49, %c0_50, %c0_51] : memref<1x8x1xf32, #tpu.memory_space<vmem>>, vector<1x8x1xf32>
      %83 = vector.shape_cast %82 : vector<1x8x1xf32> to vector<8x1xf32>
      %84 = vector.shape_cast %81 : vector<8x1xf32> to vector<1x8x1xf32>
      tpu.vector_store %arg5[%c0_49, %c0_50, %c0_51], %84 {strides = array<i32>} : memref<1x8x1xf32, #tpu.memory_space<vmem>>, vector<1x8x1xf32>,
      %cst_52 = arith.constant 0.000000e+00 : f32
      %85 = vector.broadcast %cst_52 : f32 to vector<8x1xf32>
      %c0_53 = arith.constant 0 : index
      %c0_54 = arith.constant 0 : index
      %c0_55 = arith.constant 0 : index
      %86 = vector.load %arg6[%c0_53, %c0_54, %c0_55] : memref<1x8x1xf32, #tpu.memory_space<vmem>>, vector<1x8x1xf32>
      %87 = vector.shape_cast %86 : vector<1x8x1xf32> to vector<8x1xf32>
      %88 = vector.shape_cast %85 : vector<8x1xf32> to vector<1x8x1xf32>
      tpu.vector_store %arg6[%c0_53, %c0_54, %c0_55], %88 {strides = array<i32>} : memref<1x8x1xf32, #tpu.memory_space<vmem>>, vector<1x8x1xf32>,
      %cst_56 = arith.constant 0.000000e+00 : f32
      %89 = vector.broadcast %cst_56 : f32 to vector<8x1xf32>
      %c0_57 = arith.constant 0 : index
      %c0_58 = arith.constant 0 : index
      %c0_59 = arith.constant 0 : index
      %90 = vector.load %arg7[%c0_57, %c0_58, %c0_59] : memref<1x8x1xf32, #tpu.memory_space<vmem>>, vector<1x8x1xf32>
      %91 = vector.shape_cast %90 : vector<1x8x1xf32> to vector<8x1xf32>
      %92 = vector.shape_cast %89 : vector<8x1xf32> to vector<1x8x1xf32>
      tpu.vector_store %arg7[%c0_57, %c0_58, %c0_59], %92 {strides = array<i32>} : memref<1x8x1xf32, #tpu.memory_space<vmem>>, vector<1x8x1xf32>,
      %cst_60 = arith.constant 0.000000e+00 : f32
      %93 = vector.broadcast %cst_60 : f32 to vector<1x1xf32>
      %c0_61 = arith.constant 0 : index
      %c0_62 = arith.constant 0 : index
      %c0_63 = arith.constant 0 : index
      %94 = vector.load %arg8[%c0_61, %c0_62, %c0_63] : memref<1x1x1xf32, #tpu.memory_space<vmem>>, vector<1x1x1xf32>
      %95 = vector.shape_cast %94 : vector<1x1x1xf32> to vector<1x1xf32>
      %96 = vector.shape_cast %93 : vector<1x1xf32> to vector<1x1x1xf32>
      tpu.vector_store %arg8[%c0_61, %c0_62, %c0_63], %96 {strides = array<i32>} : memref<1x1x1xf32, #tpu.memory_space<vmem>>, vector<1x1x1xf32>,
    } else {
    }
    %c0 = arith.constant 0 : index
    %c0_1 = arith.constant 0 : index
    %3 = vector.load %arg2[%c0, %c0_1] : memref<8x32xf32, #tpu.memory_space<vmem>>, vector<8x32xf32>
    %c0_2 = arith.constant 0 : index
    %c0_3 = arith.constant 0 : index
    %4 = vector.load %arg3[%c0_2, %c0_3] : memref<8x32xf32, #tpu.memory_space<vmem>>, vector<8x32xf32>
    %c7_i32 = arith.constant 7 : i32
    %5 = tpu.dynamic_rotate %3 by %c7_i32 dim 0 : vector<8x32xf32>, i32 -> vector<8x32xf32>
    %c7_i32_4 = arith.constant 7 : i32
    %6 = tpu.dynamic_rotate %4 by %c7_i32_4 dim 0 : vector<8x32xf32>, i32 -> vector<8x32xf32>
    %7 = arith.subf %3, %5 : vector<8x32xf32>
    %c0_5 = arith.constant 0 : index
    %c0_6 = arith.constant 0 : index
    %c0_7 = arith.constant 0 : index
    %8 = vector.load %arg4[%c0_5, %c0_6, %c0_7] : memref<1x8x1xf32, #tpu.memory_space<vmem>>, vector<1x8x1xf32>
    %9 = vector.shape_cast %8 : vector<1x8x1xf32> to vector<8x1xf32>
    %10 = arith.mulf %7, %7 : vector<8x32xf32>
    %cst = arith.constant dense<0.000000e+00> : vector<8xf32>
    %11 = vector.multi_reduction <add>, %10, %cst [1] : vector<8x32xf32> to vector<8xf32>
    %12 = vector.shape_cast %11 : vector<8xf32> to vector<8x1xf32>
    %13 = arith.addf %9, %12 : vector<8x1xf32>
    %c0_8 = arith.constant 0 : index
    %c0_9 = arith.constant 0 : index
    %c0_10 = arith.constant 0 : index
    %14 = vector.load %arg4[%c0_8, %c0_9, %c0_10] : memref<1x8x1xf32, #tpu.memory_space<vmem>>, vector<1x8x1xf32>
    %15 = vector.shape_cast %14 : vector<1x8x1xf32> to vector<8x1xf32>
    %16 = vector.shape_cast %13 : vector<8x1xf32> to vector<1x8x1xf32>
    tpu.vector_store %arg4[%c0_8, %c0_9, %c0_10], %16 {strides = array<i32>} : memref<1x8x1xf32, #tpu.memory_space<vmem>>, vector<1x8x1xf32>,
    %17 = arith.subf %4, %6 : vector<8x32xf32>
    %c0_11 = arith.constant 0 : index
    %c0_12 = arith.constant 0 : index
    %c0_13 = arith.constant 0 : index
    %18 = vector.load %arg5[%c0_11, %c0_12, %c0_13] : memref<1x8x1xf32, #tpu.memory_space<vmem>>, vector<1x8x1xf32>
    %19 = vector.shape_cast %18 : vector<1x8x1xf32> to vector<8x1xf32>
    %20 = arith.mulf %17, %17 : vector<8x32xf32>
    %cst_14 = arith.constant dense<0.000000e+00> : vector<8xf32>
    %21 = vector.multi_reduction <add>, %20, %cst_14 [1] : vector<8x32xf32> to vector<8xf32>
    %22 = vector.shape_cast %21 : vector<8xf32> to vector<8x1xf32>
    %23 = arith.addf %19, %22 : vector<8x1xf32>
    %c0_15 = arith.constant 0 : index
    %c0_16 = arith.constant 0 : index
    %c0_17 = arith.constant 0 : index
    %24 = vector.load %arg5[%c0_15, %c0_16, %c0_17] : memref<1x8x1xf32, #tpu.memory_space<vmem>>, vector<1x8x1xf32>
    %25 = vector.shape_cast %24 : vector<1x8x1xf32> to vector<8x1xf32>
    %26 = vector.shape_cast %23 : vector<8x1xf32> to vector<1x8x1xf32>
    tpu.vector_store %arg5[%c0_15, %c0_16, %c0_17], %26 {strides = array<i32>} : memref<1x8x1xf32, #tpu.memory_space<vmem>>, vector<1x8x1xf32>,
    %27 = arith.subf %3, %6 : vector<8x32xf32>
    %c0_18 = arith.constant 0 : index
    %c0_19 = arith.constant 0 : index
    %c0_20 = arith.constant 0 : index
    %28 = vector.load %arg6[%c0_18, %c0_19, %c0_20] : memref<1x8x1xf32, #tpu.memory_space<vmem>>, vector<1x8x1xf32>
    %29 = vector.shape_cast %28 : vector<1x8x1xf32> to vector<8x1xf32>
    %30 = arith.mulf %27, %27 : vector<8x32xf32>
    %cst_21 = arith.constant dense<0.000000e+00> : vector<8xf32>
    %31 = vector.multi_reduction <add>, %30, %cst_21 [1] : vector<8x32xf32> to vector<8xf32>
    %32 = vector.shape_cast %31 : vector<8xf32> to vector<8x1xf32>
    %33 = arith.addf %29, %32 : vector<8x1xf32>
    %c0_22 = arith.constant 0 : index
    %c0_23 = arith.constant 0 : index
    %c0_24 = arith.constant 0 : index
    %34 = vector.load %arg6[%c0_22, %c0_23, %c0_24] : memref<1x8x1xf32, #tpu.memory_space<vmem>>, vector<1x8x1xf32>
    %35 = vector.shape_cast %34 : vector<1x8x1xf32> to vector<8x1xf32>
    %36 = vector.shape_cast %33 : vector<8x1xf32> to vector<1x8x1xf32>
    tpu.vector_store %arg6[%c0_22, %c0_23, %c0_24], %36 {strides = array<i32>} : memref<1x8x1xf32, #tpu.memory_space<vmem>>, vector<1x8x1xf32>,
    %37 = arith.subf %5, %4 : vector<8x32xf32>
    %c0_25 = arith.constant 0 : index
    %c0_26 = arith.constant 0 : index
    %c0_27 = arith.constant 0 : index
    %38 = vector.load %arg7[%c0_25, %c0_26, %c0_27] : memref<1x8x1xf32, #tpu.memory_space<vmem>>, vector<1x8x1xf32>
    %39 = vector.shape_cast %38 : vector<1x8x1xf32> to vector<8x1xf32>
    %40 = arith.mulf %37, %37 : vector<8x32xf32>
    %cst_28 = arith.constant dense<0.000000e+00> : vector<8xf32>
    %41 = vector.multi_reduction <add>, %40, %cst_28 [1] : vector<8x32xf32> to vector<8xf32>
    %42 = vector.shape_cast %41 : vector<8xf32> to vector<8x1xf32>
    %43 = arith.addf %39, %42 : vector<8x1xf32>
    %c0_29 = arith.constant 0 : index
    %c0_30 = arith.constant 0 : index
    %c0_31 = arith.constant 0 : index
    %44 = vector.load %arg7[%c0_29, %c0_30, %c0_31] : memref<1x8x1xf32, #tpu.memory_space<vmem>>, vector<1x8x1xf32>
    %45 = vector.shape_cast %44 : vector<1x8x1xf32> to vector<8x1xf32>
    %46 = vector.shape_cast %43 : vector<8x1xf32> to vector<1x8x1xf32>
    tpu.vector_store %arg7[%c0_29, %c0_30, %c0_31], %46 {strides = array<i32>} : memref<1x8x1xf32, #tpu.memory_space<vmem>>, vector<1x8x1xf32>,
    %cst_32 = arith.constant dense<0.000000e+00> : vector<32xf32>
    %47 = vector.multi_reduction <add>, %3, %cst_32 [0] : vector<8x32xf32> to vector<32xf32>
    %48 = vector.shape_cast %47 : vector<32xf32> to vector<1x32xf32>
    %cst_33 = arith.constant dense<0.000000e+00> : vector<32xf32>
    %49 = vector.multi_reduction <add>, %4, %cst_33 [0] : vector<8x32xf32> to vector<32xf32>
    %50 = vector.shape_cast %49 : vector<32xf32> to vector<1x32xf32>
    %51 = arith.addf %48, %50 : vector<1x32xf32>
    %cst_34 = arith.constant 6.250000e-02 : f32
    %52 = vector.broadcast %cst_34 : f32 to vector<1x32xf32>
    %53 = arith.mulf %51, %52 : vector<1x32xf32>
    %54 = vector.broadcast %53 : vector<1x32xf32> to vector<8x32xf32>
    %55 = arith.subf %3, %54 : vector<8x32xf32>
    %56 = vector.broadcast %53 : vector<1x32xf32> to vector<8x32xf32>
    %57 = arith.subf %4, %56 : vector<8x32xf32>
    %58 = arith.mulf %55, %55 : vector<8x32xf32>
    %59 = vector.shape_cast %58 : vector<8x32xf32> to vector<1x8x32xf32>
    %cst_35 = arith.constant dense<0.000000e+00> : vector<1xf32>
    %60 = vector.multi_reduction <add>, %59, %cst_35 [1, 2] : vector<1x8x32xf32> to vector<1xf32>
    %61 = vector.shape_cast %60 : vector<1xf32> to vector<1x1x1xf32>
    %62 = vector.extract %61[0, 0, 0] : f32 from vector<1x1x1xf32>
    %63 = arith.mulf %57, %57 : vector<8x32xf32>
    %64 = vector.shape_cast %63 : vector<8x32xf32> to vector<1x8x32xf32>
    %cst_36 = arith.constant dense<0.000000e+00> : vector<1xf32>
    %65 = vector.multi_reduction <add>, %64, %cst_36 [1, 2] : vector<1x8x32xf32> to vector<1xf32>
    %66 = vector.shape_cast %65 : vector<1xf32> to vector<1x1x1xf32>
    %67 = vector.extract %66[0, 0, 0] : f32 from vector<1x1x1xf32>
    %68 = arith.addf %62, %67 : f32
    %cst_37 = arith.constant 3.200000e+01 : f32
    %69 = arith.mulf %cst_37, %68 : f32
    %c0_38 = arith.constant 0 : index
    %c0_39 = arith.constant 0 : index
    %c0_40 = arith.constant 0 : index
    %70 = vector.load %arg8[%c0_38, %c0_39, %c0_40] : memref<1x1x1xf32, #tpu.memory_space<vmem>>, vector<1x1x1xf32>
    %71 = vector.shape_cast %70 : vector<1x1x1xf32> to vector<1x1xf32>
    %72 = vector.broadcast %69 : f32 to vector<1x1xf32>
    %73 = arith.addf %71, %72 : vector<1x1xf32>
    %c0_41 = arith.constant 0 : index
    %c0_42 = arith.constant 0 : index
    %c0_43 = arith.constant 0 : index
    %74 = vector.load %arg8[%c0_41, %c0_42, %c0_43] : memref<1x1x1xf32, #tpu.memory_space<vmem>>, vector<1x1x1xf32>
    %75 = vector.shape_cast %74 : vector<1x1x1xf32> to vector<1x1xf32>
    %76 = vector.shape_cast %73 : vector<1x1xf32> to vector<1x1x1xf32>
    tpu.vector_store %arg8[%c0_41, %c0_42, %c0_43], %76 {strides = array<i32>} : memref<1x1x1xf32, #tpu.memory_space<vmem>>, vector<1x1x1xf32>,
    return
  }
  func.func @transform_0(%arg0: i32, %arg1: i32) -> (i32, i32) {
    %c1_i32 = arith.constant 1 : i32
    %0 = arith.muli %arg0, %c1_i32 : i32
    %1 = arith.addi %0, %arg1 : i32
    %c0_i32 = arith.constant 0 : i32
    %c0_i32_0 = arith.constant 0 : i32
    return %c0_i32, %1 : i32, i32
  }
  func.func @transform_1(%arg0: i32, %arg1: i32) -> (i32, i32) {
    %c1_i32 = arith.constant 1 : i32
    %0 = arith.muli %arg0, %c1_i32 : i32
    %1 = arith.addi %0, %arg1 : i32
    %c0_i32 = arith.constant 0 : i32
    %c0_i32_0 = arith.constant 0 : i32
    return %c0_i32, %1 : i32, i32
  }
  func.func @transform_2(%arg0: i32, %arg1: i32) -> (i32, i32, i32) {
    %c0_i32 = arith.constant 0 : i32
    %c0_i32_0 = arith.constant 0 : i32
    %c0_i32_1 = arith.constant 0 : i32
    return %arg0, %c0_i32, %c0_i32_0 : i32, i32, i32
  }
  func.func @transform_3(%arg0: i32, %arg1: i32) -> (i32, i32, i32) {
    %c0_i32 = arith.constant 0 : i32
    %c0_i32_0 = arith.constant 0 : i32
    %c0_i32_1 = arith.constant 0 : i32
    return %arg0, %c0_i32, %c0_i32_0 : i32, i32, i32
  }
  func.func @transform_4(%arg0: i32, %arg1: i32) -> (i32, i32, i32) {
    %c0_i32 = arith.constant 0 : i32
    %c0_i32_0 = arith.constant 0 : i32
    %c0_i32_1 = arith.constant 0 : i32
    return %arg0, %c0_i32, %c0_i32_0 : i32, i32, i32
  }
  func.func @transform_5(%arg0: i32, %arg1: i32) -> (i32, i32, i32) {
    %c0_i32 = arith.constant 0 : i32
    %c0_i32_0 = arith.constant 0 : i32
    %c0_i32_1 = arith.constant 0 : i32
    return %arg0, %c0_i32, %c0_i32_0 : i32, i32, i32
  }
  func.func @transform_6(%arg0: i32, %arg1: i32) -> (i32, i32, i32) {
    %c0_i32 = arith.constant 0 : i32
    %c0_i32_0 = arith.constant 0 : i32
    %c0_i32_1 = arith.constant 0 : i32
    return %arg0, %c0_i32, %c0_i32_0 : i32, i32, i32
  }
}

</mosaic_0001>

<bundles_post_ra>
// kernel: tpu_custom_call.1
= control target key start
LH: loop header
LB: loop body
LE: loop exit
PB: predicated region body
PF: predicated region fallthrough
CT: control target
= control target key end

     0   :  { %12 = vsyncpa [#allocation3], 0  ;;  %s371_s0 = inlined_call_operand.hbm [shape: f32[8,32], index: 0, kind: input, shape index: {}]   ;;  %s372_s1 = inlined_call_operand.hbm [shape: f32[8,32], index: 1, kind: input, shape index: {}]   ;;  %s373_s2 = inlined_call_operand.vmem [shape: f32[1,8,1], index: 2, kind: output, shape index: {0}]   ;;  %s374_s3 = inlined_call_operand.vmem [shape: f32[1,8,1], index: 3, kind: output, shape index: {1}]   ;;  %s375_s4 = inlined_call_operand.vmem [shape: f32[1,8,1], index: 4, kind: output, shape index: {2}]   ;;  %s376_s5 = inlined_call_operand.vmem [shape: f32[1,8,1], index: 5, kind: output, shape index: {3}]   ;;  %s377_s6 = inlined_call_operand.hbm [shape: f32[1,1,1], index: 6, kind: output, shape index: {4}]  }
   0x1   :  { %13 = vsyncpa [#allocation6], 0 }
   0x2   :  { %14 = vsyncpa [#allocation4], 0  ;;  %s23_s23 = sshll.u32 %s371_s0, 4  ;;  %s269_s24 = smov [#allocation2]   ;;  %s24_s23 = int_to_ptr.hbm [resolvable:$true] %s23_s23 }
   0x3   :  { %s25_s25 = sshll.u32 %s269_s24, 4  ;;  %s37_s28 = sshll.u32 %s372_s1, 4  ;;  %s26_s25 = int_to_ptr.vmem [resolvable:$true] %s25_s25  ;;  %s38_s28 = int_to_ptr.hbm [resolvable:$true] %s37_s28 }
   0x4   :  { %28 = dma.hbm_to_vmem [thread:$0]  %s24_s23, 128, %s26_s25, [#allocation3]  }
   0x5   :  { %s270_s29 = smov [#allocation5]  }
   0x6   :  { %s39_s30 = sshll.u32 %s270_s29, 4  ;;  %s40_s30 = int_to_ptr.vmem [resolvable:$true] %s39_s30 }
   0x7   :  { %42 = dma.hbm_to_vmem [thread:$0]  %s38_s28, 128, %s40_s30, [#allocation6]  }
   0x8   :  { %263 = dma.done.wait [#allocation3], 128  }
   0x9   :  { %264 = vsyncadd [#allocation3], 4294967168 }
   0xa   :  { %265 = dma.done.wait [#allocation6], 128  }
   0xb   :  { %266 = vsyncadd [#allocation6], 4294967168  ;;  %vm71_vm0 = vcmask 261120   ;;  %v64_v0 = vld [vmem:[#allocation2] sm:$0xff]  ;;  %v65_v1 = vld [vmem:[#allocation5] sm:$0xff]  ;;  %vm57_vm1 = vcmask 7168  }
   0xc   :  { %v102_v2 = vsel %vm71_vm0, %v64_v0, 0.0  ;;  %v109_v3 = vsel %vm71_vm0, %v65_v1, 0.0  ;;  %v67_v4 = vrot.slane %v65_v1, 1  ;;  %v66_v5 = vrot.slane %v64_v0, 1  ;;  %s272_s30 = smov [#allocation7]   ;;  %s164_s9 = sshll.u32 %s377_s6, 4  ;;  %s165_s9 = int_to_ptr.hbm [resolvable:$true] %s164_s9 }
   0xd   :  { %v103_v6 = vrot.slane %v102_v2, 4  ;;  %v110_v7 = vrot.slane %v109_v3, 4  ;;  %v271_v52 = vmov 0.0   ;;  %vm62_vm2 = vcmask 0   ;;  %s162_s0 = sshll.u32 %s272_s30, 4  ;;  %s163_s0 = int_to_ptr.vmem [resolvable:$true] %s162_s0 }
   0xe   :  { %v86_v8 = vsub.f32 %v64_v0, %v67_v4  ;;  %v68_v9 = vsub.f32 %v64_v0, %v66_v5  ;;  %v94_v14 = vsub.f32 %v66_v5, %v65_v1  ;;  %v78_v15 = vsub.f32 %v65_v1, %v67_v4  ;;  %60 = vst.msk [vmem:[%s375_s4] sm:$0xff] %vm57_vm1, %v271_v52 }
   0xf   :  { %v104_v10 = vadd.f32 %v103_v6, %v102_v2  ;;  %v111_v11 = vadd.f32 %v110_v7, %v109_v3  ;;  %58 = vst.msk [vmem:[%s373_s2] sm:$0xff] %vm57_vm1, %v271_v52 }
  0x10   :  { %v88_v12 = vmul.f32 %v86_v8, %v86_v8  ;;  %v70_v13 = vmul.f32 %v68_v9, %v68_v9  ;;  %v96_v22 = vmul.f32 %v94_v14, %v94_v14  ;;  %v80_v23 = vmul.f32 %v78_v15, %v78_v15  ;;  %59 = vst.msk [vmem:[%s374_s3] sm:$0xff] %vm57_vm1, %v271_v52 }
  0x11   :  { %v105_v16 = vrot.slane %v104_v10, 2  ;;  %v112_v17 = vrot.slane %v111_v11, 2  ;;  %61 = vst.msk [vmem:[%s376_s5] sm:$0xff] %vm57_vm1, %v271_v52 }
  0x12   :  { %v89_v18 = vsel %vm71_vm0, %v88_v12, 0.0  ;;  %v72_v19 = vsel %vm71_vm0, %v70_v13, 0.0  ;;  %v97_v28 = vsel %vm71_vm0, %v96_v22, 0.0  ;;  %v81_v29 = vsel %vm71_vm0, %v80_v23, 0.0  ;;  %63 = vst.msk [vmem:[#allocation7] sm:$0x1] %vm62_vm2, %v271_v52 }
  0x13   :  { %v106_v20 = vadd.f32 %v105_v16, %v104_v10  ;;  %v113_v21 = vadd.f32 %v112_v17, %v111_v11  ;;  %90 = vadd.xlane.f32.xlu2 %v89_v18  ;;  %73 = vadd.xlane.f32.xlu1 %v72_v19 }
  0x15   :  { %v107_v24 = vrot.slane %v106_v20, 1  ;;  %v114_v25 = vrot.slane %v113_v21, 1  ;;  %v87_v55 = vld [vmem:[%s375_s4] sm:$0xff] }
  0x16   :  { %v69_v57 = vld [vmem:[%s373_s2] sm:$0xff] }
  0x17   :  { %v108_v26 = vadd.f32 %v107_v24, %v106_v20  ;;  %v115_v27 = vadd.f32 %v114_v25, %v113_v21  ;;  %v79_v62 = vld [vmem:[%s374_s3] sm:$0xff] }
  0x18   :  { %v95_v60 = vld [vmem:[%s376_s5] sm:$0xff] }
  0x19   :  { %v116_v30 = vadd.f32 %v115_v27, %v108_v26 }
  0x1b   :  { %v117_v31 = vmul.f32 0.0625, %v116_v30  ;;  %98 = vadd.xlane.f32.xlu2 %v97_v28  ;;  %82 = vadd.xlane.f32.xlu1 %v81_v29 }
  0x1d   :  { %v118_v32 = vsub.f32 %v64_v0, %v117_v31  ;;  %v119_v34 = vsub.f32 %v65_v1, %v117_v31  ;;  %v144_v1 = vld [vmem:[#allocation7] sm:$0x1] }
  0x1f   :  { %v120_v33 = vmul.f32 %v118_v32, %v118_v32  ;;  %v131_v36 = vmul.f32 %v119_v34, %v119_v34 }
  0x21   :  { %v121_v35 = vsel %vm71_vm0, %v120_v33, 0.0  ;;  %v132_v37 = vsel %vm71_vm0, %v131_v36, 0.0 }
  0x22   :  { %122 = vadd.xlane.f32.xlu0 %v121_v35 }
  0x2a   :  { %133 = vadd.xlane.f32.xlu0 %v132_v37 }
  0x86   :  { %v91_v53 = vpop.xlane.xlu2 %90  ;;  %v74_v54 = vpop.xlane.xlu1 %73 }
  0x87   :  { %v92_v56 = vadd.f32 %v91_v53, %v87_v55  ;;  %v75_v58 = vadd.f32 %v74_v54, %v69_v57 }
  0x89   :  { %93 = vst.msk [vmem:[%s375_s4] sm:$0xff] %vm57_vm1, %v92_v56 }
  0x8a   :  { %77 = vst.msk [vmem:[%s373_s2] sm:$0xff] %vm57_vm1, %v75_v58 }
  0x8e   :  { %v99_v59 = vpop.xlane.xlu2 %98  ;;  %v83_v61 = vpop.xlane.xlu1 %82 }
  0x8f   :  { %v100_v63 = vadd.f32 %v99_v59, %v95_v60  ;;  %v84_v0 = vadd.f32 %v83_v61, %v79_v62 }
  0x91   :  { %101 = vst.msk [vmem:[%s376_s5] sm:$0xff] %vm57_vm1, %v100_v63 }
  0x92   :  { %85 = vst.msk [vmem:[%s374_s3] sm:$0xff] %vm57_vm1, %v84_v0 }
  0x95   :  { %v123_v38 = vpop.xlane.xlu0 %122 }
  0x96   :  { %v124_v39 = vrot.slane %v123_v38, 4 }
  0x98   :  { %v125_v40 = vadd.f32 %v124_v39, %v123_v38 }
  0x9a   :  { %v126_v41 = vrot.slane %v125_v40, 2 }
  0x9c   :  { %v127_v42 = vadd.f32 %v126_v41, %v125_v40 }
  0x9d   :  { %v134_v43 = vpop.xlane.xlu0 %133 }
  0x9e   :  { %v135_v44 = vrot.slane %v134_v43, 4  ;;  %v128_v45 = vrot.slane %v127_v42, 1 }
  0xa0   :  { %v136_v46 = vadd.f32 %v135_v44, %v134_v43  ;;  %v129_v47 = vadd.f32 %v128_v45, %v127_v42 }
  0xa2   :  { %v137_v48 = vrot.slane %v136_v46, 2  ;;  %183 = vpush %v129_v47 }
  0xa4   :  { %v138_v49 = vadd.f32 %v137_v48, %v136_v46 }
  0xa6   :  { %v139_v50 = vrot.slane %v138_v49, 1 }
  0xa8   :  { %v140_v51 = vadd.f32 %v139_v50, %v138_v49 }
  0xaa   :  { %185 = vpush %v140_v51 }
  0xd3   :  { %s184_s27 = spop %183 }
  0xdb   :  { %s186_s28 = spop %185 }
  0xdc   :  { %s142_s29 = sadd.f32 %s186_s28, %s184_s27 }
  0xde   :  { %s143_s1 = smul.f32 32.0, %s142_s29 }
  0xe0   :  { %v145_v2 = vstv %s143_s1 }
  0xe1   :  { %v146_v3 = vadd.f32 %v145_v2, %v144_v1 }
  0xe3   :  { %148 = vst.msk [vmem:[#allocation7] sm:$0x1] %vm62_vm2, %v146_v3 }
  0xe4   :  { %167 = dma.vmem_to_hbm [thread:$0]  %s163_s0, 16, %s165_s9, [#allocation4]  }
  0xe5   :  { %267 = dma.done.wait [#allocation4], 16  }
  0xe6   :  { %268 = vsyncadd [#allocation4], 4294967280 }
  0xe7   :  { %180 = vsyncpa [#allocation3], 1 }
  0xe8   :  { %181 = vsyncpa [#allocation6], 1 }
  0xe9   :  { %182 = vsyncpa [#allocation4], 1 }

</bundles_post_ra>
